<compile_context>
chip_gen: v7x
topology: tpu7x:2x2x1
jax: 0.10.0
libtpu: 0.0.40
codegen_flags: <defaults>
</compile_context>

<pallas_src>
import jax
import jax.numpy as jnp
from jax.experimental import pallas as pl
from jax.experimental.pallas import tpu as pltpu


def _bilinear_up2_matrix(n_in: int) -> jnp.ndarray:
    """[2*n_in, n_in] matrix implementing PyTorch bilinear x2 upsampling
    (align_corners=False, half-pixel centers) along a single axis."""
    n_out = 2 * n_in
    i = jnp.arange(n_out, dtype=jnp.float32)
    src = jnp.maximum((i + 0.5) / 2.0 - 0.5, 0.0)          # PyTorch clamps below 0
    i0 = jnp.minimum(jnp.floor(src).astype(jnp.int32), n_in - 1)
    i1 = jnp.minimum(i0 + 1, n_in - 1)
    w1 = src - i0.astype(jnp.float32)
    w0 = 1.0 - w1
    rows = jnp.arange(n_out)
    U = jnp.zeros((n_out, n_in), jnp.float32)
    U = U.at[rows, i0].add(w0)
    U = U.at[rows, i1].add(w1)
    return U


def _skip_upsample_kernel(wb_ref, ut_ref, x_ref, y_ref, o_ref):
    # wb_ref: [N*Cout, N*Cin]  block-diagonal 1x1-conv weights, kron(I_N, W)
    # ut_ref: [H*W, 4*H*W]     separable bilinear upsample matrix, kron(Uh,Uw)^T
    # x_ref:  [N*Cin, H*W]     input, flattened spatial dim on the lane axis
    # y_ref:  [N*Cout, 4*H*W]  skip connection (aliased with the output in HBM)
    # o_ref:  [N*Cout, 4*H*W]  output slab, (8,128)-dense
    z = jnp.dot(wb_ref[...], x_ref[...],
                preferred_element_type=jnp.float32)        # [N*Cout, H*W]
    up = jnp.dot(z, ut_ref[...],
                 preferred_element_type=jnp.float32)       # [N*Cout, 4*H*W]
    # Skip-add in f32, single cast at the very end.
    o_ref[...] = (up + y_ref[...].astype(jnp.float32)).astype(o_ref.dtype)


def skip_upsample(x, y, conv_w):
    """x: [N, in_c+factor, H, W], y: [N, in_c, 2H, 2W],
    conv_w: [in_c, in_c+factor, 1, 1]  ->  [N, in_c, 2H, 2W]"""
    n, cin, h, w = x.shape
    cout = conv_w.shape[0]
    h2, w2 = 2 * h, 2 * w
    hw, hw4 = h * w, h2 * w2

    # Constant operands (weight preprocessing, done once outside the kernel).
    uh = _bilinear_up2_matrix(h)                                   # [2H, H]
    uw = _bilinear_up2_matrix(w)                                   # [2W, W]
    ut = jnp.kron(uh, uw).T.astype(x.dtype)                        # [HW, 4HW]
    wmat = conv_w.reshape(cout, cin)
    wb = jnp.kron(jnp.eye(n, dtype=wmat.dtype), wmat).astype(x.dtype)  # [N*Cout, N*Cin]

    # Lane/sublane-dense 2-D views of the tensors.
    x2 = x.reshape(n * cin, hw)                                    # [N*Cin, HW]
    y2 = y.astype(x.dtype).reshape(n * cout, hw4)                  # [N*Cout, 4HW]

    vmem = pl.BlockSpec(memory_space=pltpu.MemorySpace.VMEM)
    out2 = pl.pallas_call(
        _skip_upsample_kernel,
        out_shape=jax.ShapeDtypeStruct((n * cout, hw4), x.dtype),
        in_specs=[vmem, vmem, vmem, vmem],   # whole arrays resident in VMEM,
        out_specs=vmem,                      # single kernel invocation (no grid)
        input_output_aliases={3: 0},         # y is dead after the skip-add
    )(wb, ut, x2, y2)
    return out2.reshape(n, cout, h2, w2)


# ---------------------------------------------------------------------------
# Pure-JAX reference, written in the original module's order (upsample THEN
# 1x1 conv) and via direct gather-based interpolation, i.e. independent of the
# matrices used by the kernel (non-circular check).
# ---------------------------------------------------------------------------
def _upsample2x_bilinear_ref(img):
    """F.interpolate(scale_factor=2, mode='bilinear', align_corners=False)."""
    _, _, h, w = img.shape

    def taps(size):
        i = jnp.arange(2 * size, dtype=jnp.float32)
        src = jnp.maximum((i + 0.5) / 2.0 - 0.5, 0.0)
        i0 = jnp.floor(src).astype(jnp.int32)
        i1 = jnp.minimum(i0 + 1, size - 1)
        frac = src - i0.astype(jnp.float32)
        return i0, i1, frac

    h0, h1, fh = taps(h)
    w0, w1, fw = taps(w)
    rows = (img[:, :, h0, :] * (1.0 - fh)[None, None, :, None]
            + img[:, :, h1, :] * fh[None, None, :, None])          # [N,C,2H,W]
    out = rows[:, :, :, w0] * (1.0 - fw) + rows[:, :, :, w1] * fw   # [N,C,2H,2W]
    return out


def skip_upsample_ref(x, y, conv_w):
    cout, cin = conv_w.shape[0], conv_w.shape[1]
    up = _upsample2x_bilinear_ref(x)
    out = jnp.einsum('oc,nchw->nohw', conv_w.reshape(cout, cin), up,
                     precision=jax.lax.Precision.HIGHEST)
    return out + y


if __name__ == "__main__":
    in_c, factor = 4, 4
    n, h, w = 2, 16, 16

    key = jax.random.PRNGKey(0)
    kx, ky, kw = jax.random.split(key, 3)
    x = jax.random.normal(kx, (n, in_c + factor, h, w), jnp.float32)
    y = jax.random.normal(ky, (n, in_c, 2 * h, 2 * w), jnp.float32)
    # Deterministic synthetic weights for nn.Conv2d(in_c+factor, in_c, 1, bias=False)
    conv_w = (jax.random.normal(kw, (in_c, in_c + factor, 1, 1), jnp.float32)
              * (1.0 / jnp.sqrt(in_c + factor)))

    out = jax.block_until_ready(jax.jit(skip_upsample)(x, y, conv_w))
    ref = skip_upsample_ref(x, y, conv_w)

    assert out.shape == (n, in_c, 2 * h, 2 * w)
    max_err = float(jnp.max(jnp.abs(out - ref)))
    # Tolerance covers the MXU's default f32 contraction passes; expected
    # error with full-f32 contraction is ~1e-6.
    assert jnp.allclose(out, ref, atol=2e-3, rtol=2e-3), max_err
    print("KERNEL_OK")
</pallas_src>

<mosaic_0001>
module attributes {stable_mosaic.version = 11 : i64} {
  func.func private @main(%arg0: i32) attributes {dimension_semantics = [#tpu.dimension_semantics<core_parallel>], iteration_bounds = array<i64: 2>, tpu.core_type = #tpu.core_type<sc_scalar_subcore>, window_params = []} {
    return
  }
}

module attributes {stable_mosaic.version = 11 : i64} {
  func.func private @main(%arg0: i32) attributes {dimension_semantics = [#tpu.dimension_semantics<core_parallel>], iteration_bounds = array<i64: 2>, tpu.core_type = #tpu.core_type<sc_scalar_subcore>, window_params = []} {
    return
  }
}

module attributes {stable_mosaic.version = 11 : i64} {
  func.func @_skip_upsample_kernel(%arg0: memref<8x16xf32, #tpu.memory_space<vmem>>, %arg1: memref<256x1024xf32, #tpu.memory_space<vmem>>, %arg2: memref<16x256xf32, #tpu.memory_space<vmem>>, %arg3: memref<8x1024xf32, #tpu.memory_space<vmem>>, %arg4: memref<8x1024xf32, #tpu.memory_space<vmem>>) attributes {dimension_semantics = [], scalar_prefetch = 0 : i64, scratch_operands = 0 : i64, tpu.core_type = #tpu.core_type<tc>} {
    %c0 = arith.constant 0 : index
    %c0_0 = arith.constant 0 : index
    %0 = vector.load %arg0[%c0, %c0_0] : memref<8x16xf32, #tpu.memory_space<vmem>>, vector<8x16xf32>
    %c0_1 = arith.constant 0 : index
    %c0_2 = arith.constant 0 : index
    %1 = vector.load %arg2[%c0_1, %c0_2] : memref<16x256xf32, #tpu.memory_space<vmem>>, vector<16x256xf32>
    %cst = arith.constant dense<0.000000e+00> : vector<8x256xf32>
    %2 = tpu.matmul %0, %1, %cst {dimension_numbers = #tpu.dot_dimension_numbers<[1], [0], [0], [1], [0, 0, 1, 1], [], []>} : vector<8x16xf32>, vector<16x256xf32>, vector<8x256xf32> -> vector<8x256xf32>
    %c0_3 = arith.constant 0 : index
    %c0_4 = arith.constant 0 : index
    %3 = vector.load %arg1[%c0_3, %c0_4] : memref<256x1024xf32, #tpu.memory_space<vmem>>, vector<256x1024xf32>
    %cst_5 = arith.constant dense<0.000000e+00> : vector<8x1024xf32>
    %4 = tpu.matmul %2, %3, %cst_5 {dimension_numbers = #tpu.dot_dimension_numbers<[1], [0], [0], [1], [0, 0, 1, 1], [], []>} : vector<8x256xf32>, vector<256x1024xf32>, vector<8x1024xf32> -> vector<8x1024xf32>
    %c0_6 = arith.constant 0 : index
    %c0_7 = arith.constant 0 : index
    %5 = vector.load %arg3[%c0_6, %c0_7] : memref<8x1024xf32, #tpu.memory_space<vmem>>, vector<8x1024xf32>
    %6 = arith.addf %4, %5 : vector<8x1024xf32>
    %c0_8 = arith.constant 0 : index
    %c0_9 = arith.constant 0 : index
    %7 = vector.load %arg4[%c0_8, %c0_9] : memref<8x1024xf32, #tpu.memory_space<vmem>>, vector<8x1024xf32>
    tpu.vector_store %arg4[%c0_8, %c0_9], %6 {strides = array<i32>} : memref<8x1024xf32, #tpu.memory_space<vmem>>, vector<8x1024xf32>,
    return
  }
}

</mosaic_0001>

<bundles_post_ra>
// kernel: skip_upsample.1
= control target key start
LH: loop header
LB: loop body
LE: loop exit
PB: predicated region body
PF: predicated region fallthrough
CT: control target
= control target key end

     0   :  { %v919_v3 = vmov 0.0   ;;  %vm22_vm0 = vcmask 130048   ;;  %s1783_s2 = inlined_call_operand.vmem [shape: f32[16,256], index: 2, kind: input, shape index: {}]   ;;  %s1784_s0 = inlined_call_operand.vmem [shape: f32[8,16], index: 0, kind: input, shape index: {}]   ;;  %s1785_s1 = inlined_call_operand.vmem [shape: f32[256,1024], index: 1, kind: input, shape index: {}]   ;;  %s1786_s3 = inlined_call_operand.vmem [shape: f32[8,1024], index: 3, kind: input, shape index: {}, may-alias: {3,4}]   ;;  %s1787_s4 = inlined_call_operand.vmem [shape: f32[8,1024], index: 4, kind: output, shape index: {}, may-alias: {3,4}]  }
   0x1   :  { %v19_v0 = vld [vmem:[%s1783_s2 + $0x8] sm:$0xff]  ;;  %v21_v1 = vld [vmem:[%s1783_s2 + $0x18] sm:$0xff]  ;;  %v18_v2 = vld [vmem:[%s1783_s2] sm:$0xff]  ;;  %90 = vmatprep.mubr.f32.mxu0 %v919_v3 }
   0x2   :  { %v658_v4 = vpack.c.bf16 %v21_v1, %v19_v0  ;;  %v20_v5 = vld [vmem:[%s1783_s2 + $0x10] sm:$0xff]  ;;  %v98_v6 = vld [vmem:[%s1785_s1 + $0x8] sm:$0xff]  ;;  %v17_v8 = vld [vmem:[%s1784_s0] sm:$0xff] }
   0x3   :  { %v660_v7 = vpack.c.bf16 %v20_v5, %v18_v2  ;;  %v106_v9 = vld [vmem:[%s1785_s1 + $0x48] sm:$0xff]  ;;  %v100_v10 = vld [vmem:[%s1785_s1 + $0x18] sm:$0xff]  ;;  %v97_v14 = vld [vmem:[%s1785_s1] sm:$0xff] }
   0x4   :  { %v108_v11 = vld [vmem:[%s1785_s1 + $0x58] sm:$0xff]  ;;  %659 = vmatprep.subr.bf16.mxu0 %v658_v4  ;;  %v662_v12 = vpack.c.bf16 %v106_v9, %v98_v6  ;;  %v105_v15 = vld [vmem:[%s1785_s1 + $0x40] sm:$0xff]  ;;  %v99_v16 = vld [vmem:[%s1785_s1 + $0x10] sm:$0xff] }
   0x5   :  { %v726_v13 = vpack.c.bf16 %v108_v11, %v100_v10  ;;  %661 = vmatpush1.bf16.msra.mxu0 %v660_v7  ;;  %v664_v17 = vpack.c.bf16 %v105_v15, %v97_v14  ;;  %v107_v18 = vld [vmem:[%s1785_s1 + $0x50] sm:$0xff]  ;;  %v114_v19 = vld [vmem:[%s1785_s1 + $0x88] sm:$0xff]  ;;  %v116_v23 = vld [vmem:[%s1785_s1 + $0x98] sm:$0xff] }
   0x6   :  { %v122_v20 = vld [vmem:[%s1785_s1 + $0xc8] sm:$0xff]  ;;  %663 = vmatprep.subr.bf16.mxu1 %v662_v12  ;;  %v728_v21 = vpack.c.bf16 %v107_v18, %v99_v16  ;;  %v124_v24 = vld [vmem:[%s1785_s1 + $0xd8] sm:$0xff]  ;;  %v113_v25 = vld [vmem:[%s1785_s1 + $0x80] sm:$0xff] }
   0x7   :  { %727 = vmatprep.subr.bf16.mxu0 %v726_v13  ;;  %v666_v22 = vpack.c.bf16 %v122_v20, %v114_v19  ;;  %665 = vmatpush1.bf16.msra.mxu1 %v664_v17  ;;  %v730_v26 = vpack.c.bf16 %v124_v24, %v116_v23  ;;  %v121_v27 = vld [vmem:[%s1785_s1 + $0xc0] sm:$0xff]  ;;  %v115_v28 = vld [vmem:[%s1785_s1 + $0x90] sm:$0xff]  ;;  %v130_v31 = vld [vmem:[%s1785_s1 + $0x108] sm:$0xff] }
   0x8   :  { %v123_v29 = vld [vmem:[%s1785_s1 + $0xd0] sm:$0xff]  ;;  %657 = vmatmul.mubr.msk.f32.vlgmr.msra.gmra.mrb[0].mxu0 %vm22_vm0, %v17_v8  ;;  %v668_v30 = vpack.c.bf16 %v121_v27, %v113_v25  ;;  %v138_v32 = vld [vmem:[%s1785_s1 + $0x148] sm:$0xff]  ;;  %v132_v33 = vld [vmem:[%s1785_s1 + $0x118] sm:$0xff] }
   0x9   :  { %667 = vmatprep.subr.bf16.mxu1 %v666_v22  ;;  %729 = vmatpush1.bf16.msra.mxu0 %v728_v21  ;;  %v732_v34 = vpack.c.bf16 %v123_v29, %v115_v28  ;;  %v670_v35 = vpack.c.bf16 %v138_v32, %v130_v31  ;;  %v140_v36 = vld [vmem:[%s1785_s1 + $0x158] sm:$0xff]  ;;  %v129_v37 = vld [vmem:[%s1785_s1 + $0x100] sm:$0xff]  ;;  %v131_v40 = vld [vmem:[%s1785_s1 + $0x110] sm:$0xff] }
   0xa   :  { %v137_v38 = vld [vmem:[%s1785_s1 + $0x140] sm:$0xff]  ;;  %731 = vmatprep.subr.bf16.mxu0 %v730_v26  ;;  %v734_v39 = vpack.c.bf16 %v140_v36, %v132_v33  ;;  %v139_v41 = vld [vmem:[%s1785_s1 + $0x150] sm:$0xff]  ;;  %v146_v42 = vld [vmem:[%s1785_s1 + $0x188] sm:$0xff] }
   0xb   :  { %669 = vmatpush1.bf16.msra.mxu1 %v668_v30  ;;  %v672_v43 = vpack.c.bf16 %v137_v38, %v129_v37  ;;  %v154_v44 = vld [vmem:[%s1785_s1 + $0x1c8] sm:$0xff]  ;;  %v148_v45 = vld [vmem:[%s1785_s1 + $0x198] sm:$0xff]  ;;  %v145_v48 = vld [vmem:[%s1785_s1 + $0x180] sm:$0xff]  ;;  %v736_v50 = vpack.c.bf16 %v139_v41, %v131_v40 }
   0xc   :  { %v156_v46 = vld [vmem:[%s1785_s1 + $0x1d8] sm:$0xff]  ;;  %671 = vmatprep.subr.bf16.mxu1 %v670_v35  ;;  %v674_v47 = vpack.c.bf16 %v154_v44, %v146_v42  ;;  %v153_v49 = vld [vmem:[%s1785_s1 + $0x1c0] sm:$0xff]  ;;  %v162_v51 = vld [vmem:[%s1785_s1 + $0x208] sm:$0xff] }
   0xd   :  { %733 = vmatpush1.bf16.msra.mxu0 %v732_v34  ;;  %v170_v52 = vld [vmem:[%s1785_s1 + $0x248] sm:$0xff]  ;;  %v738_v53 = vpack.c.bf16 %v156_v46, %v148_v45  ;;  %v147_v54 = vld [vmem:[%s1785_s1 + $0x190] sm:$0xff]  ;;  %v676_v56 = vpack.c.bf16 %v153_v49, %v145_v48  ;;  %v164_v57 = vld [vmem:[%s1785_s1 + $0x218] sm:$0xff] }
   0xe   :  { %735 = vmatprep.subr.bf16.mxu0 %v734_v39  ;;  %v155_v55 = vld [vmem:[%s1785_s1 + $0x1d0] sm:$0xff]  ;;  %v172_v58 = vld [vmem:[%s1785_s1 + $0x258] sm:$0xff]  ;;  %v678_v59 = vpack.c.bf16 %v170_v52, %v162_v51  ;;  %v161_v60 = vld [vmem:[%s1785_s1 + $0x200] sm:$0xff] }
   0xf   :  { %673 = vmatpush1.bf16.msra.mxu1 %v672_v43  ;;  %v169_v61 = vld [vmem:[%s1785_s1 + $0x240] sm:$0xff]  ;;  %v740_v62 = vpack.c.bf16 %v155_v55, %v147_v54  ;;  %v178_v63 = vld [vmem:[%s1785_s1 + $0x288] sm:$0xff]  ;;  %v742_v1 = vpack.c.bf16 %v172_v58, %v164_v57  ;;  %v163_v2 = vld [vmem:[%s1785_s1 + $0x210] sm:$0xff] }
  0x10   :  { %675 = vmatprep.subr.bf16.mxu1 %v674_v47  ;;  %v186_v0 = vld [vmem:[%s1785_s1 + $0x2c8] sm:$0xff]  ;;  %v171_v3 = vld [vmem:[%s1785_s1 + $0x250] sm:$0xff]  ;;  %v680_v4 = vpack.c.bf16 %v169_v61, %v161_v60  ;;  %v180_v5 = vld [vmem:[%s1785_s1 + $0x298] sm:$0xff] }
  0x11   :  { %737 = vmatpush1.bf16.msra.mxu0 %v736_v50  ;;  %v188_v6 = vld [vmem:[%s1785_s1 + $0x2d8] sm:$0xff]  ;;  %v682_v7 = vpack.c.bf16 %v186_v0, %v178_v63  ;;  %v177_v8 = vld [vmem:[%s1785_s1 + $0x280] sm:$0xff]  ;;  %v744_v10 = vpack.c.bf16 %v171_v3, %v163_v2  ;;  %v194_v11 = vld [vmem:[%s1785_s1 + $0x308] sm:$0xff] }
  0x12   :  { %739 = vmatprep.subr.bf16.mxu0 %v738_v53  ;;  %v185_v9 = vld [vmem:[%s1785_s1 + $0x2c0] sm:$0xff]  ;;  %v202_v12 = vld [vmem:[%s1785_s1 + $0x348] sm:$0xff]  ;;  %v746_v13 = vpack.c.bf16 %v188_v6, %v180_v5  ;;  %v179_v14 = vld [vmem:[%s1785_s1 + $0x290] sm:$0xff] }
  0x13   :  { %677 = vmatpush1.bf16.msra.mxu1 %v676_v56  ;;  %v187_v15 = vld [vmem:[%s1785_s1 + $0x2d0] sm:$0xff]  ;;  %v684_v16 = vpack.c.bf16 %v185_v9, %v177_v8  ;;  %v196_v17 = vld [vmem:[%s1785_s1 + $0x318] sm:$0xff]  ;;  %v686_v19 = vpack.c.bf16 %v202_v12, %v194_v11  ;;  %v193_v20 = vld [vmem:[%s1785_s1 + $0x300] sm:$0xff] }
  0x14   :  { %679 = vmatprep.subr.bf16.mxu1 %v678_v59  ;;  %v204_v18 = vld [vmem:[%s1785_s1 + $0x358] sm:$0xff]  ;;  %v201_v21 = vld [vmem:[%s1785_s1 + $0x340] sm:$0xff]  ;;  %v748_v22 = vpack.c.bf16 %v187_v15, %v179_v14  ;;  %v210_v23 = vld [vmem:[%s1785_s1 + $0x388] sm:$0xff] }
  0x15   :  { %741 = vmatpush1.bf16.msra.mxu0 %v740_v62  ;;  %v218_v24 = vld [vmem:[%s1785_s1 + $0x3c8] sm:$0xff]  ;;  %v750_v25 = vpack.c.bf16 %v204_v18, %v196_v17  ;;  %v195_v26 = vld [vmem:[%s1785_s1 + $0x310] sm:$0xff]  ;;  %v688_v28 = vpack.c.bf16 %v201_v21, %v193_v20  ;;  %v212_v29 = vld [vmem:[%s1785_s1 + $0x398] sm:$0xff] }
  0x16   :  { %743 = vmatprep.subr.bf16.mxu0 %v742_v1  ;;  %v203_v27 = vld [vmem:[%s1785_s1 + $0x350] sm:$0xff]  ;;  %v220_v30 = vld [vmem:[%s1785_s1 + $0x3d8] sm:$0xff]  ;;  %v690_v31 = vpack.c.bf16 %v218_v24, %v210_v23  ;;  %v209_v32 = vld [vmem:[%s1785_s1 + $0x380] sm:$0xff] }
  0x17   :  { %681 = vmatpush1.bf16.msra.mxu1 %v680_v4  ;;  %v217_v33 = vld [vmem:[%s1785_s1 + $0x3c0] sm:$0xff]  ;;  %v752_v34 = vpack.c.bf16 %v203_v27, %v195_v26  ;;  %v226_v35 = vld [vmem:[%s1785_s1 + $0x408] sm:$0xff]  ;;  %v754_v37 = vpack.c.bf16 %v220_v30, %v212_v29  ;;  %v211_v38 = vld [vmem:[%s1785_s1 + $0x390] sm:$0xff] }
  0x18   :  { %683 = vmatprep.subr.bf16.mxu1 %v682_v7  ;;  %v234_v36 = vld [vmem:[%s1785_s1 + $0x448] sm:$0xff]  ;;  %v219_v39 = vld [vmem:[%s1785_s1 + $0x3d0] sm:$0xff]  ;;  %v692_v40 = vpack.c.bf16 %v217_v33, %v209_v32  ;;  %v228_v41 = vld [vmem:[%s1785_s1 + $0x418] sm:$0xff] }
  0x19   :  { %745 = vmatpush1.bf16.msra.mxu0 %v744_v10  ;;  %v236_v42 = vld [vmem:[%s1785_s1 + $0x458] sm:$0xff]  ;;  %v694_v43 = vpack.c.bf16 %v234_v36, %v226_v35  ;;  %v225_v44 = vld [vmem:[%s1785_s1 + $0x400] sm:$0xff]  ;;  %v756_v46 = vpack.c.bf16 %v219_v39, %v211_v38  ;;  %v242_v47 = vld [vmem:[%s1785_s1 + $0x488] sm:$0xff] }
  0x1a   :  { %747 = vmatprep.subr.bf16.mxu0 %v746_v13  ;;  %v233_v45 = vld [vmem:[%s1785_s1 + $0x440] sm:$0xff]  ;;  %v250_v48 = vld [vmem:[%s1785_s1 + $0x4c8] sm:$0xff]  ;;  %v758_v49 = vpack.c.bf16 %v236_v42, %v228_v41  ;;  %v227_v50 = vld [vmem:[%s1785_s1 + $0x410] sm:$0xff] }
  0x1b   :  { %685 = vmatpush1.bf16.msra.mxu1 %v684_v16  ;;  %v235_v51 = vld [vmem:[%s1785_s1 + $0x450] sm:$0xff]  ;;  %v696_v52 = vpack.c.bf16 %v233_v45, %v225_v44  ;;  %v244_v53 = vld [vmem:[%s1785_s1 + $0x498] sm:$0xff]  ;;  %v698_v55 = vpack.c.bf16 %v250_v48, %v242_v47  ;;  %v241_v56 = vld [vmem:[%s1785_s1 + $0x480] sm:$0xff] }
  0x1c   :  { %687 = vmatprep.subr.bf16.mxu1 %v686_v19  ;;  %v252_v54 = vld [vmem:[%s1785_s1 + $0x4d8] sm:$0xff]  ;;  %v249_v57 = vld [vmem:[%s1785_s1 + $0x4c0] sm:$0xff]  ;;  %v760_v58 = vpack.c.bf16 %v235_v51, %v227_v50  ;;  %v258_v59 = vld [vmem:[%s1785_s1 + $0x508] sm:$0xff] }
  0x1d   :  { %749 = vmatpush1.bf16.msra.mxu0 %v748_v22  ;;  %v266_v60 = vld [vmem:[%s1785_s1 + $0x548] sm:$0xff]  ;;  %v762_v61 = vpack.c.bf16 %v252_v54, %v244_v53  ;;  %v243_v62 = vld [vmem:[%s1785_s1 + $0x490] sm:$0xff]  ;;  %v700_v0 = vpack.c.bf16 %v249_v57, %v241_v56  ;;  %v260_v1 = vld [vmem:[%s1785_s1 + $0x518] sm:$0xff] }
  0x1e   :  { %751 = vmatprep.subr.bf16.mxu0 %v750_v25  ;;  %v251_v63 = vld [vmem:[%s1785_s1 + $0x4d0] sm:$0xff]  ;;  %v268_v2 = vld [vmem:[%s1785_s1 + $0x558] sm:$0xff]  ;;  %v702_v3 = vpack.c.bf16 %v266_v60, %v258_v59  ;;  %v257_v4 = vld [vmem:[%s1785_s1 + $0x500] sm:$0xff] }
  0x1f   :  { %689 = vmatpush1.bf16.msra.mxu1 %v688_v28  ;;  %v265_v5 = vld [vmem:[%s1785_s1 + $0x540] sm:$0xff]  ;;  %v764_v6 = vpack.c.bf16 %v251_v63, %v243_v62  ;;  %v274_v7 = vld [vmem:[%s1785_s1 + $0x588] sm:$0xff]  ;;  %v766_v9 = vpack.c.bf16 %v268_v2, %v260_v1  ;;  %v259_v10 = vld [vmem:[%s1785_s1 + $0x510] sm:$0xff] }
  0x20   :  { %691 = vmatprep.subr.bf16.mxu1 %v690_v31  ;;  %v282_v8 = vld [vmem:[%s1785_s1 + $0x5c8] sm:$0xff]  ;;  %v267_v11 = vld [vmem:[%s1785_s1 + $0x550] sm:$0xff]  ;;  %v704_v12 = vpack.c.bf16 %v265_v5, %v257_v4  ;;  %v276_v13 = vld [vmem:[%s1785_s1 + $0x598] sm:$0xff] }
  0x21   :  { %753 = vmatpush1.bf16.msra.mxu0 %v752_v34  ;;  %v284_v14 = vld [vmem:[%s1785_s1 + $0x5d8] sm:$0xff]  ;;  %v706_v15 = vpack.c.bf16 %v282_v8, %v274_v7  ;;  %v273_v16 = vld [vmem:[%s1785_s1 + $0x580] sm:$0xff]  ;;  %v768_v18 = vpack.c.bf16 %v267_v11, %v259_v10  ;;  %v290_v19 = vld [vmem:[%s1785_s1 + $0x608] sm:$0xff] }
  0x22   :  { %755 = vmatprep.subr.bf16.mxu0 %v754_v37  ;;  %v281_v17 = vld [vmem:[%s1785_s1 + $0x5c0] sm:$0xff]  ;;  %v298_v20 = vld [vmem:[%s1785_s1 + $0x648] sm:$0xff]  ;;  %v770_v21 = vpack.c.bf16 %v284_v14, %v276_v13  ;;  %v275_v22 = vld [vmem:[%s1785_s1 + $0x590] sm:$0xff] }
  0x23   :  { %693 = vmatpush1.bf16.msra.mxu1 %v692_v40  ;;  %v283_v23 = vld [vmem:[%s1785_s1 + $0x5d0] sm:$0xff]  ;;  %v708_v24 = vpack.c.bf16 %v281_v17, %v273_v16  ;;  %v292_v25 = vld [vmem:[%s1785_s1 + $0x618] sm:$0xff]  ;;  %v710_v27 = vpack.c.bf16 %v298_v20, %v290_v19  ;;  %v289_v28 = vld [vmem:[%s1785_s1 + $0x600] sm:$0xff] }
  0x24   :  { %695 = vmatprep.subr.bf16.mxu1 %v694_v43  ;;  %v300_v26 = vld [vmem:[%s1785_s1 + $0x658] sm:$0xff]  ;;  %v297_v29 = vld [vmem:[%s1785_s1 + $0x640] sm:$0xff]  ;;  %v772_v30 = vpack.c.bf16 %v283_v23, %v275_v22  ;;  %v306_v31 = vld [vmem:[%s1785_s1 + $0x688] sm:$0xff] }
  0x25   :  { %757 = vmatpush1.bf16.msra.mxu0 %v756_v46  ;;  %v314_v32 = vld [vmem:[%s1785_s1 + $0x6c8] sm:$0xff]  ;;  %v774_v33 = vpack.c.bf16 %v300_v26, %v292_v25  ;;  %v291_v34 = vld [vmem:[%s1785_s1 + $0x610] sm:$0xff]  ;;  %v712_v36 = vpack.c.bf16 %v297_v29, %v289_v28  ;;  %v308_v37 = vld [vmem:[%s1785_s1 + $0x698] sm:$0xff] }
  0x26   :  { %759 = vmatprep.subr.bf16.mxu0 %v758_v49  ;;  %v299_v35 = vld [vmem:[%s1785_s1 + $0x650] sm:$0xff]  ;;  %v316_v38 = vld [vmem:[%s1785_s1 + $0x6d8] sm:$0xff]  ;;  %v714_v39 = vpack.c.bf16 %v314_v32, %v306_v31  ;;  %v305_v40 = vld [vmem:[%s1785_s1 + $0x680] sm:$0xff] }
  0x27   :  { %697 = vmatpush1.bf16.msra.mxu1 %v696_v52  ;;  %v313_v41 = vld [vmem:[%s1785_s1 + $0x6c0] sm:$0xff]  ;;  %v776_v42 = vpack.c.bf16 %v299_v35, %v291_v34  ;;  %v322_v43 = vld [vmem:[%s1785_s1 + $0x708] sm:$0xff]  ;;  %v778_v45 = vpack.c.bf16 %v316_v38, %v308_v37  ;;  %v307_v46 = vld [vmem:[%s1785_s1 + $0x690] sm:$0xff] }
  0x28   :  { %699 = vmatprep.subr.bf16.mxu1 %v698_v55  ;;  %v330_v44 = vld [vmem:[%s1785_s1 + $0x748] sm:$0xff]  ;;  %v315_v47 = vld [vmem:[%s1785_s1 + $0x6d0] sm:$0xff]  ;;  %v716_v48 = vpack.c.bf16 %v313_v41, %v305_v40  ;;  %v324_v49 = vld [vmem:[%s1785_s1 + $0x718] sm:$0xff] }
  0x29   :  { %761 = vmatpush1.bf16.msra.mxu0 %v760_v58  ;;  %v332_v50 = vld [vmem:[%s1785_s1 + $0x758] sm:$0xff]  ;;  %v718_v51 = vpack.c.bf16 %v330_v44, %v322_v43  ;;  %v321_v52 = vld [vmem:[%s1785_s1 + $0x700] sm:$0xff]  ;;  %v780_v54 = vpack.c.bf16 %v315_v47, %v307_v46  ;;  %v338_v55 = vld [vmem:[%s1785_s1 + $0x788] sm:$0xff] }
  0x2a   :  { %763 = vmatprep.subr.bf16.mxu0 %v762_v61  ;;  %v329_v53 = vld [vmem:[%s1785_s1 + $0x740] sm:$0xff]  ;;  %v346_v56 = vld [vmem:[%s1785_s1 + $0x7c8] sm:$0xff]  ;;  %v782_v57 = vpack.c.bf16 %v332_v50, %v324_v49  ;;  %v323_v58 = vld [vmem:[%s1785_s1 + $0x710] sm:$0xff] }
  0x2b   :  { %701 = vmatpush1.bf16.msra.mxu1 %v700_v0  ;;  %v331_v59 = vld [vmem:[%s1785_s1 + $0x750] sm:$0xff]  ;;  %v720_v60 = vpack.c.bf16 %v329_v53, %v321_v52  ;;  %v340_v61 = vld [vmem:[%s1785_s1 + $0x798] sm:$0xff]  ;;  %v722_v63 = vpack.c.bf16 %v346_v56, %v338_v55  ;;  %v337_v0 = vld [vmem:[%s1785_s1 + $0x780] sm:$0xff] }
  0x2c   :  { %703 = vmatprep.subr.bf16.mxu1 %v702_v3  ;;  %v348_v62 = vld [vmem:[%s1785_s1 + $0x7d8] sm:$0xff]  ;;  %v345_v1 = vld [vmem:[%s1785_s1 + $0x7c0] sm:$0xff]  ;;  %v784_v2 = vpack.c.bf16 %v331_v59, %v323_v58  ;;  %v339_v4 = vld [vmem:[%s1785_s1 + $0x790] sm:$0xff] }
  0x2d   :  { %765 = vmatpush1.bf16.msra.mxu0 %v764_v6  ;;  %v786_v3 = vpack.c.bf16 %v348_v62, %v340_v61  ;;  %v347_v5 = vld [vmem:[%s1785_s1 + $0x7d0] sm:$0xff]  ;;  %v724_v6 = vpack.c.bf16 %v345_v1, %v337_v0  ;;  %v102_v8 = vld [vmem:[%s1785_s1 + $0x28] sm:$0xff]  ;;  %v104_v10 = vld [vmem:[%s1785_s1 + $0x38] sm:$0xff] }
  0x2e   :  { %767 = vmatprep.subr.bf16.mxu0 %v766_v9  ;;  %v788_v7 = vpack.c.bf16 %v347_v5, %v339_v4  ;;  %v110_v9 = vld [vmem:[%s1785_s1 + $0x68] sm:$0xff]  ;;  %v101_v14 = vld [vmem:[%s1785_s1 + $0x20] sm:$0xff]  ;;  %v103_v16 = vld [vmem:[%s1785_s1 + $0x30] sm:$0xff] }
  0x2f   :  { %705 = vmatpush1.bf16.msra.mxu1 %v704_v12  ;;  %v790_v11 = vpack.c.bf16 %v110_v9, %v102_v8  ;;  %v112_v12 = vld [vmem:[%s1785_s1 + $0x78] sm:$0xff]  ;;  %v111_v17 = vld [vmem:[%s1785_s1 + $0x70] sm:$0xff]  ;;  %v126_v19 = vld [vmem:[%s1785_s1 + $0xe8] sm:$0xff] }
  0x30   :  { %707 = vmatprep.subr.bf16.mxu1 %v706_v15  ;;  %v854_v13 = vpack.c.bf16 %v112_v12, %v104_v10  ;;  %v109_v15 = vld [vmem:[%s1785_s1 + $0x60] sm:$0xff]  ;;  %v120_v20 = vld [vmem:[%s1785_s1 + $0xb8] sm:$0xff]  ;;  %v119_v28 = vld [vmem:[%s1785_s1 + $0xb0] sm:$0xff] }
  0x31   :  { %769 = vmatpush1.bf16.msra.mxu0 %v768_v18  ;;  %v118_v18 = vld [vmem:[%s1785_s1 + $0xa8] sm:$0xff]  ;;  %v792_v23 = vpack.c.bf16 %v109_v15, %v101_v14  ;;  %v117_v25 = vld [vmem:[%s1785_s1 + $0xa0] sm:$0xff]  ;;  %v127_v29 = vld [vmem:[%s1785_s1 + $0xf0] sm:$0xff] }
  0x32   :  { %771 = vmatprep.subr.bf16.mxu0 %v770_v21  ;;  %v128_v21 = vld [vmem:[%s1785_s1 + $0xf8] sm:$0xff]  ;;  %v125_v26 = vld [vmem:[%s1785_s1 + $0xe0] sm:$0xff]  ;;  %v794_v31 = vpack.c.bf16 %v126_v19, %v118_v18  ;;  %v860_v37 = vpack.c.bf16 %v127_v29, %v119_v28  ;;  %v143_v43 = vld [vmem:[%s1785_s1 + $0x170] sm:$0xff] }
  0x33   :  { %709 = vmatpush1.bf16.msra.mxu1 %v708_v24  ;;  %v856_v24 = vpack.c.bf16 %v111_v17, %v103_v16  ;;  %v858_v32 = vpack.c.bf16 %v128_v21, %v120_v20  ;;  %v136_v34 = vld [vmem:[%s1785_s1 + $0x138] sm:$0xff]  ;;  %v133_v38 = vld [vmem:[%s1785_s1 + $0x120] sm:$0xff]  ;;  %v150_v44 = vld [vmem:[%s1785_s1 + $0x1a8] sm:$0xff] }
  0x34   :  { %711 = vmatprep.subr.bf16.mxu1 %v710_v27  ;;  %v144_v35 = vld [vmem:[%s1785_s1 + $0x178] sm:$0xff]  ;;  %v149_v50 = vld [vmem:[%s1785_s1 + $0x1a0] sm:$0xff]  ;;  %v159_v55 = vld [vmem:[%s1785_s1 + $0x1f0] sm:$0xff] }
  0x35   :  { %773 = vmatpush1.bf16.msra.mxu0 %v772_v30  ;;  %v134_v30 = vld [vmem:[%s1785_s1 + $0x128] sm:$0xff]  ;;  %v862_v41 = vpack.c.bf16 %v144_v35, %v136_v34  ;;  %v152_v46 = vld [vmem:[%s1785_s1 + $0x1b8] sm:$0xff]  ;;  %v165_v62 = vld [vmem:[%s1785_s1 + $0x220] sm:$0xff] }
  0x36   :  { %775 = vmatprep.subr.bf16.mxu0 %v774_v33  ;;  %v142_v33 = vld [vmem:[%s1785_s1 + $0x168] sm:$0xff]  ;;  %v160_v47 = vld [vmem:[%s1785_s1 + $0x1f8] sm:$0xff]  ;;  %v181_v10 = vld [vmem:[%s1785_s1 + $0x2a0] sm:$0xff] }
  0x37   :  { %713 = vmatpush1.bf16.msra.mxu1 %v712_v36  ;;  %v796_v36 = vpack.c.bf16 %v125_v26, %v117_v25  ;;  %v798_v40 = vpack.c.bf16 %v142_v33, %v134_v30  ;;  %v866_v53 = vpack.c.bf16 %v160_v47, %v152_v46  ;;  %v166_v56 = vld [vmem:[%s1785_s1 + $0x228] sm:$0xff]  ;;  %v168_v58 = vld [vmem:[%s1785_s1 + $0x238] sm:$0xff]  ;;  %v183_v14 = vld [vmem:[%s1785_s1 + $0x2b0] sm:$0xff] }
  0x38   :  { %715 = vmatprep.subr.bf16.mxu1 %v714_v39  ;;  %v141_v39 = vld [vmem:[%s1785_s1 + $0x160] sm:$0xff]  ;;  %v176_v59 = vld [vmem:[%s1785_s1 + $0x278] sm:$0xff]  ;;  %v182_v4 = vld [vmem:[%s1785_s1 + $0x2a8] sm:$0xff] }
  0x39   :  { %777 = vmatpush1.bf16.msra.mxu0 %v776_v42  ;;  %v135_v42 = vld [vmem:[%s1785_s1 + $0x130] sm:$0xff]  ;;  %v870_v1 = vpack.c.bf16 %v176_v59, %v168_v58  ;;  %v190_v5 = vld [vmem:[%s1785_s1 + $0x2e8] sm:$0xff]  ;;  %v200_v18 = vld [vmem:[%s1785_s1 + $0x338] sm:$0xff] }
  0x3a   :  { %779 = vmatprep.subr.bf16.mxu0 %v778_v45  ;;  %v158_v45 = vld [vmem:[%s1785_s1 + $0x1e8] sm:$0xff]  ;;  %v864_v49 = vpack.c.bf16 %v143_v43, %v135_v42  ;;  %v810_v12 = vpack.c.bf16 %v190_v5, %v182_v4  ;;  %v191_v15 = vld [vmem:[%s1785_s1 + $0x2f0] sm:$0xff]  ;;  %v208_v19 = vld [vmem:[%s1785_s1 + $0x378] sm:$0xff] }
  0x3b   :  { %717 = vmatpush1.bf16.msra.mxu1 %v716_v48  ;;  %v800_v48 = vpack.c.bf16 %v141_v39, %v133_v38  ;;  %v802_v52 = vpack.c.bf16 %v158_v45, %v150_v44  ;;  %v198_v16 = vld [vmem:[%s1785_s1 + $0x328] sm:$0xff]  ;;  %v876_v21 = vpack.c.bf16 %v191_v15, %v183_v14  ;;  %v878_v26 = vpack.c.bf16 %v208_v19, %v200_v18  ;;  %v207_v28 = vld [vmem:[%s1785_s1 + $0x370] sm:$0xff]  ;;  %v213_v35 = vld [vmem:[%s1785_s1 + $0x3a0] sm:$0xff] }
  0x3c   :  { %719 = vmatprep.subr.bf16.mxu1 %v718_v51  ;;  %v157_v51 = vld [vmem:[%s1785_s1 + $0x1e0] sm:$0xff]  ;;  %v206_v17 = vld [vmem:[%s1785_s1 + $0x368] sm:$0xff]  ;;  %v215_v39 = vld [vmem:[%s1785_s1 + $0x3b0] sm:$0xff] }
  0x3d   :  { %781 = vmatpush1.bf16.msra.mxu0 %v780_v54  ;;  %v151_v54 = vld [vmem:[%s1785_s1 + $0x1b0] sm:$0xff]  ;;  %v814_v25 = vpack.c.bf16 %v206_v17, %v198_v16  ;;  %v214_v29 = vld [vmem:[%s1785_s1 + $0x3a8] sm:$0xff]  ;;  %v232_v43 = vld [vmem:[%s1785_s1 + $0x438] sm:$0xff] }
  0x3e   :  { %783 = vmatprep.subr.bf16.mxu0 %v782_v57  ;;  %v174_v57 = vld [vmem:[%s1785_s1 + $0x268] sm:$0xff]  ;;  %v868_v61 = vpack.c.bf16 %v159_v55, %v151_v54  ;;  %v240_v44 = vld [vmem:[%s1785_s1 + $0x478] sm:$0xff]  ;;  %v229_v47 = vld [vmem:[%s1785_s1 + $0x420] sm:$0xff] }
  0x3f   :  { %721 = vmatpush1.bf16.msra.mxu1 %v720_v60  ;;  %v804_v60 = vpack.c.bf16 %v157_v51, %v149_v50  ;;  %v806_v0 = vpack.c.bf16 %v174_v57, %v166_v56  ;;  %v222_v30 = vld [vmem:[%s1785_s1 + $0x3e8] sm:$0xff]  ;;  %v886_v50 = vpack.c.bf16 %v240_v44, %v232_v43  ;;  %v231_v51 = vld [vmem:[%s1785_s1 + $0x430] sm:$0xff]  ;;  %v248_v55 = vld [vmem:[%s1785_s1 + $0x4b8] sm:$0xff] }
  0x40   :  { %723 = vmatprep.subr.bf16.mxu1 %v722_v63  ;;  %v173_v63 = vld [vmem:[%s1785_s1 + $0x260] sm:$0xff]  ;;  %v238_v42 = vld [vmem:[%s1785_s1 + $0x468] sm:$0xff]  ;;  %v256_v56 = vld [vmem:[%s1785_s1 + $0x4f8] sm:$0xff] }
  0x41   :  { %785 = vmatpush1.bf16.msra.mxu0 %v784_v2  ;;  %v167_v2 = vld [vmem:[%s1785_s1 + $0x230] sm:$0xff]  ;;  %v808_v8 = vpack.c.bf16 %v173_v63, %v165_v62  ;;  %v254_v54 = vld [vmem:[%s1785_s1 + $0x4e8] sm:$0xff]  ;;  %v245_v59 = vld [vmem:[%s1785_s1 + $0x4a0] sm:$0xff]  ;;  %v890_v62 = vpack.c.bf16 %v256_v56, %v248_v55 }
  0x42   :  { %787 = vmatprep.subr.bf16.mxu0 %v786_v3  ;;  %v175_v3 = vld [vmem:[%s1785_s1 + $0x270] sm:$0xff]  ;;  %v272_v4 = vld [vmem:[%s1785_s1 + $0x578] sm:$0xff]  ;;  %v286_v14 = vld [vmem:[%s1785_s1 + $0x5e8] sm:$0xff] }
  0x43   :  { %725 = vmatpush1.bf16.msra.mxu1 %v724_v6  ;;  %v184_v6 = vld [vmem:[%s1785_s1 + $0x2b8] sm:$0xff]  ;;  %v872_v9 = vpack.c.bf16 %v175_v3, %v167_v2  ;;  %v247_v63 = vld [vmem:[%s1785_s1 + $0x4b0] sm:$0xff]  ;;  %v270_v2 = vld [vmem:[%s1785_s1 + $0x568] sm:$0xff] }
  0x44   :  { %791 = vmatprep.subr.bf16.mxu1 %v790_v11  ;;  %v189_v11 = vld [vmem:[%s1785_s1 + $0x2e0] sm:$0xff]  ;;  %v264_v3 = vld [vmem:[%s1785_s1 + $0x538] sm:$0xff] }
  0x45   :  { %789 = vmatpush1.bf16.msra.mxu0 %v788_v7  ;;  %v192_v7 = vld [vmem:[%s1785_s1 + $0x2f8] sm:$0xff]  ;;  %v812_v20 = vpack.c.bf16 %v189_v11, %v181_v10  ;;  %v894_v10 = vpack.c.bf16 %v272_v4, %v264_v3  ;;  %v263_v11 = vld [vmem:[%s1785_s1 + $0x530] sm:$0xff]  ;;  %v277_v19 = vld [vmem:[%s1785_s1 + $0x5a0] sm:$0xff] }
  0x46   :  { %855 = vmatprep.subr.bf16.mxu0 %v854_v13  ;;  %v874_v13 = vpack.c.bf16 %v192_v7, %v184_v6  ;;  %v261_v7 = vld [vmem:[%s1785_s1 + $0x520] sm:$0xff]  ;;  %v280_v15 = vld [vmem:[%s1785_s1 + $0x5b8] sm:$0xff] }
  0x47   :  { %v288_v16 = vld [vmem:[%s1785_s1 + $0x5f8] sm:$0xff]  ;;  %v309_v44 = vld [vmem:[%s1785_s1 + $0x6a0] sm:$0xff] }
  0x48   :  { %v325_v56 = vld [vmem:[%s1785_s1 + $0x720] sm:$0xff] }
  0x49   :  { %v341_v4 = vld [vmem:[%s1785_s1 + $0x7a0] sm:$0xff] }
  0xdb   :  { %v1381_v22 = vpop.f32.mrb[0].mxu0 }
  0xdc   :  { %v94_v27 = vpop.f32.mrb[1].mxu0 }
  0xdd   :  { %425 = vmatprep.mubr.f32.mxu1 %v94_v27  ;;  %496 = vmatprep.mubr.f32.mxu0 %v94_v27 }
  0xde   :  { %426 = vmatmul.mubr.f32.vlgmr.msra.gmra.mrb[0].mxu1 %v1381_v22  ;;  %497 = vmatmul.mubr.f32.vlgmr.msra.gmra.mrb[2].mxu0 %v1381_v22 }
  0xdf   :  { %793 = vmatpush1.bf16.msra.mxu1 %v792_v23  ;;  %857 = vmatpush1.bf16.msra.mxu0 %v856_v24  ;;  %v197_v23 = vld [vmem:[%s1785_s1 + $0x320] sm:$0xff] }
  0xe0   :  { %567 = vmatprep.mubr.f32.mxu1 %v94_v27  ;;  %638 = vmatprep.mubr.f32.mxu0 %v94_v27  ;;  %v205_v24 = vld [vmem:[%s1785_s1 + $0x360] sm:$0xff]  ;;  %v199_v27 = vld [vmem:[%s1785_s1 + $0x330] sm:$0xff] }
  0xe1   :  { %795 = vmatprep.subr.bf16.mxu1 %v794_v31  ;;  %859 = vmatprep.subr.bf16.mxu0 %v858_v32  ;;  %v216_v31 = vld [vmem:[%s1785_s1 + $0x3b8] sm:$0xff]  ;;  %v816_v33 = vpack.c.bf16 %v205_v24, %v197_v23  ;;  %v880_v34 = vpack.c.bf16 %v207_v28, %v199_v27  ;;  %v898_v23 = vpack.c.bf16 %v288_v16, %v280_v15  ;;  %v279_v24 = vld [vmem:[%s1785_s1 + $0x5b0] sm:$0xff]  ;;  %v302_v27 = vld [vmem:[%s1785_s1 + $0x668] sm:$0xff] }
  0xe2   :  { %v224_v32 = vld [vmem:[%s1785_s1 + $0x3f8] sm:$0xff] }
  0xe3   :  { %797 = vmatpush1.bf16.msra.mxu1 %v796_v36  ;;  %861 = vmatpush1.bf16.msra.mxu0 %v860_v37  ;;  %v221_v36 = vld [vmem:[%s1785_s1 + $0x3e0] sm:$0xff]  ;;  %v818_v37 = vpack.c.bf16 %v222_v30, %v214_v29  ;;  %v882_v38 = vpack.c.bf16 %v224_v32, %v216_v31  ;;  %v296_v28 = vld [vmem:[%s1785_s1 + $0x638] sm:$0xff] }
  0xe4   :  { %799 = vmatprep.subr.bf16.mxu1 %v798_v40  ;;  %863 = vmatprep.subr.bf16.mxu0 %v862_v41  ;;  %v223_v40 = vld [vmem:[%s1785_s1 + $0x3f0] sm:$0xff]  ;;  %v230_v41 = vld [vmem:[%s1785_s1 + $0x428] sm:$0xff]  ;;  %v820_v45 = vpack.c.bf16 %v221_v36, %v213_v35  ;;  %v304_v29 = vld [vmem:[%s1785_s1 + $0x678] sm:$0xff] }
  0xe5   :  { %v884_v46 = vpack.c.bf16 %v223_v40, %v215_v39  ;;  %v293_v32 = vld [vmem:[%s1785_s1 + $0x620] sm:$0xff]  ;;  %v902_v35 = vpack.c.bf16 %v304_v29, %v296_v28  ;;  %v295_v36 = vld [vmem:[%s1785_s1 + $0x630] sm:$0xff]  ;;  %v318_v39 = vld [vmem:[%s1785_s1 + $0x6e8] sm:$0xff] }
  0xe6   :  { %v312_v40 = vld [vmem:[%s1785_s1 + $0x6b8] sm:$0xff] }
  0xe7   :  { %801 = vmatpush1.bf16.msra.mxu1 %v800_v48  ;;  %865 = vmatpush1.bf16.msra.mxu0 %v864_v49  ;;  %v237_v48 = vld [vmem:[%s1785_s1 + $0x460] sm:$0xff]  ;;  %v822_v49 = vpack.c.bf16 %v238_v42, %v230_v41  ;;  %v320_v41 = vld [vmem:[%s1785_s1 + $0x6f8] sm:$0xff] }
  0xe8   :  { %803 = vmatprep.subr.bf16.mxu1 %v802_v52  ;;  %867 = vmatprep.subr.bf16.mxu0 %v866_v53  ;;  %v239_v52 = vld [vmem:[%s1785_s1 + $0x470] sm:$0xff]  ;;  %v246_v53 = vld [vmem:[%s1785_s1 + $0x4a8] sm:$0xff]  ;;  %v824_v57 = vpack.c.bf16 %v237_v48, %v229_v47  ;;  %v906_v47 = vpack.c.bf16 %v320_v41, %v312_v40  ;;  %v356_v15 = vld [vmem:[%s1786_s3 + $0x18] sm:$0xff] }
  0xe9   :  { %v888_v58 = vpack.c.bf16 %v239_v52, %v231_v51  ;;  %v311_v48 = vld [vmem:[%s1785_s1 + $0x6b0] sm:$0xff]  ;;  %v334_v51 = vld [vmem:[%s1785_s1 + $0x768] sm:$0xff]  ;;  %v328_v52 = vld [vmem:[%s1785_s1 + $0x738] sm:$0xff] }
  0xeb   :  { %805 = vmatpush1.bf16.msra.mxu1 %v804_v60  ;;  %869 = vmatpush1.bf16.msra.mxu0 %v868_v61  ;;  %v253_v60 = vld [vmem:[%s1785_s1 + $0x4e0] sm:$0xff]  ;;  %v826_v61 = vpack.c.bf16 %v254_v54, %v246_v53  ;;  %v336_v53 = vld [vmem:[%s1785_s1 + $0x778] sm:$0xff] }
  0xec   :  { %807 = vmatprep.subr.bf16.mxu1 %v806_v0  ;;  %871 = vmatprep.subr.bf16.mxu0 %v870_v1  ;;  %v255_v0 = vld [vmem:[%s1785_s1 + $0x4f0] sm:$0xff]  ;;  %v262_v1 = vld [vmem:[%s1785_s1 + $0x528] sm:$0xff]  ;;  %v828_v5 = vpack.c.bf16 %v253_v60, %v245_v59  ;;  %v910_v59 = vpack.c.bf16 %v336_v53, %v328_v52 }
  0xed   :  { %v892_v6 = vpack.c.bf16 %v255_v0, %v247_v63  ;;  %v327_v60 = vld [vmem:[%s1785_s1 + $0x730] sm:$0xff]  ;;  %v350_v63 = vld [vmem:[%s1785_s1 + $0x7e8] sm:$0xff]  ;;  %v344_v0 = vld [vmem:[%s1785_s1 + $0x7b8] sm:$0xff] }
  0xef   :  { %809 = vmatpush1.bf16.msra.mxu1 %v808_v8  ;;  %873 = vmatpush1.bf16.msra.mxu0 %v872_v9  ;;  %v269_v8 = vld [vmem:[%s1785_s1 + $0x560] sm:$0xff]  ;;  %v830_v9 = vpack.c.bf16 %v270_v2, %v262_v1  ;;  %v352_v1 = vld [vmem:[%s1785_s1 + $0x7f8] sm:$0xff] }
  0xf0   :  { %811 = vmatprep.subr.bf16.mxu1 %v810_v12  ;;  %875 = vmatprep.subr.bf16.mxu0 %v874_v13  ;;  %v271_v12 = vld [vmem:[%s1785_s1 + $0x570] sm:$0xff]  ;;  %v278_v13 = vld [vmem:[%s1785_s1 + $0x5a8] sm:$0xff]  ;;  %v832_v17 = vpack.c.bf16 %v269_v8, %v261_v7  ;;  %v349_v7 = vld [vmem:[%s1785_s1 + $0x7e0] sm:$0xff] }
  0xf1   :  { %v896_v18 = vpack.c.bf16 %v271_v12, %v263_v11  ;;  %v343_v8 = vld [vmem:[%s1785_s1 + $0x7b0] sm:$0xff]  ;;  %v353_v12 = vld [vmem:[%s1786_s3] sm:$0xff] }
  0xf3   :  { %813 = vmatpush1.bf16.msra.mxu1 %v812_v20  ;;  %877 = vmatpush1.bf16.msra.mxu0 %v876_v21  ;;  %v285_v20 = vld [vmem:[%s1785_s1 + $0x5e0] sm:$0xff]  ;;  %v834_v21 = vpack.c.bf16 %v286_v14, %v278_v13  ;;  %v355_v13 = vld [vmem:[%s1786_s3 + $0x10] sm:$0xff]  ;;  %v354_v14 = vld [vmem:[%s1786_s3 + $0x8] sm:$0xff] }
  0xf4   :  { %815 = vmatprep.subr.bf16.mxu1 %v814_v25  ;;  %879 = vmatprep.subr.bf16.mxu0 %v878_v26  ;;  %v287_v25 = vld [vmem:[%s1785_s1 + $0x5f0] sm:$0xff]  ;;  %v294_v26 = vld [vmem:[%s1785_s1 + $0x628] sm:$0xff]  ;;  %v836_v30 = vpack.c.bf16 %v285_v20, %v277_v19 }
  0xf5   :  { %v900_v31 = vpack.c.bf16 %v287_v25, %v279_v24 }
  0xf7   :  { %817 = vmatpush1.bf16.msra.mxu1 %v816_v33  ;;  %881 = vmatpush1.bf16.msra.mxu0 %v880_v34  ;;  %v301_v33 = vld [vmem:[%s1785_s1 + $0x660] sm:$0xff]  ;;  %v838_v34 = vpack.c.bf16 %v302_v27, %v294_v26 }
  0xf8   :  { %819 = vmatprep.subr.bf16.mxu1 %v818_v37  ;;  %883 = vmatprep.subr.bf16.mxu0 %v882_v38  ;;  %v303_v37 = vld [vmem:[%s1785_s1 + $0x670] sm:$0xff]  ;;  %v310_v38 = vld [vmem:[%s1785_s1 + $0x6a8] sm:$0xff]  ;;  %v840_v42 = vpack.c.bf16 %v301_v33, %v293_v32 }
  0xf9   :  { %v904_v43 = vpack.c.bf16 %v303_v37, %v295_v36 }
  0xfb   :  { %821 = vmatpush1.bf16.msra.mxu1 %v820_v45  ;;  %885 = vmatpush1.bf16.msra.mxu0 %v884_v46  ;;  %v317_v45 = vld [vmem:[%s1785_s1 + $0x6e0] sm:$0xff]  ;;  %v842_v46 = vpack.c.bf16 %v318_v39, %v310_v38 }
  0xfc   :  { %823 = vmatprep.subr.bf16.mxu1 %v822_v49  ;;  %887 = vmatprep.subr.bf16.mxu0 %v886_v50  ;;  %v319_v49 = vld [vmem:[%s1785_s1 + $0x6f0] sm:$0xff]  ;;  %v326_v50 = vld [vmem:[%s1785_s1 + $0x728] sm:$0xff]  ;;  %v844_v54 = vpack.c.bf16 %v317_v45, %v309_v44 }
  0xfd   :  { %v908_v55 = vpack.c.bf16 %v319_v49, %v311_v48 }
  0xff   :  { %825 = vmatpush1.bf16.msra.mxu1 %v824_v57  ;;  %889 = vmatpush1.bf16.msra.mxu0 %v888_v58  ;;  %v333_v57 = vld [vmem:[%s1785_s1 + $0x760] sm:$0xff]  ;;  %v846_v58 = vpack.c.bf16 %v334_v51, %v326_v50 }
 0x100   :  { %827 = vmatprep.subr.bf16.mxu1 %v826_v61  ;;  %891 = vmatprep.subr.bf16.mxu0 %v890_v62  ;;  %v335_v61 = vld [vmem:[%s1785_s1 + $0x770] sm:$0xff]  ;;  %v342_v62 = vld [vmem:[%s1785_s1 + $0x7a8] sm:$0xff]  ;;  %v848_v2 = vpack.c.bf16 %v333_v57, %v325_v56 }
 0x101   :  { %v912_v3 = vpack.c.bf16 %v335_v61, %v327_v60 }
 0x103   :  { %829 = vmatpush1.bf16.msra.mxu1 %v828_v5  ;;  %893 = vmatpush1.bf16.msra.mxu0 %v892_v6  ;;  %v850_v5 = vpack.c.bf16 %v350_v63, %v342_v62  ;;  %v914_v6 = vpack.c.bf16 %v352_v1, %v344_v0 }
 0x104   :  { %831 = vmatprep.subr.bf16.mxu1 %v830_v9  ;;  %895 = vmatprep.subr.bf16.mxu0 %v894_v10  ;;  %v351_v9 = vld [vmem:[%s1785_s1 + $0x7f0] sm:$0xff]  ;;  %v852_v10 = vpack.c.bf16 %v349_v7, %v341_v4 }
 0x105   :  { %v916_v11 = vpack.c.bf16 %v351_v9, %v343_v8 }
 0x107   :  { %833 = vmatpush1.bf16.msra.mxu1 %v832_v17  ;;  %897 = vmatpush1.bf16.msra.mxu0 %v896_v18 }
 0x108   :  { %835 = vmatprep.subr.bf16.mxu1 %v834_v21  ;;  %899 = vmatprep.subr.bf16.mxu0 %v898_v23 }
 0x10b   :  { %837 = vmatpush1.bf16.msra.mxu1 %v836_v30  ;;  %901 = vmatpush1.bf16.msra.mxu0 %v900_v31 }
 0x10c   :  { %839 = vmatprep.subr.bf16.mxu1 %v838_v34  ;;  %903 = vmatprep.subr.bf16.mxu0 %v902_v35 }
 0x10f   :  { %841 = vmatpush1.bf16.msra.mxu1 %v840_v42  ;;  %905 = vmatpush1.bf16.msra.mxu0 %v904_v43 }
 0x110   :  { %843 = vmatprep.subr.bf16.mxu1 %v842_v46  ;;  %907 = vmatprep.subr.bf16.mxu0 %v906_v47 }
 0x113   :  { %845 = vmatpush1.bf16.msra.mxu1 %v844_v54  ;;  %909 = vmatpush1.bf16.msra.mxu0 %v908_v55 }
 0x114   :  { %847 = vmatprep.subr.bf16.mxu1 %v846_v58  ;;  %911 = vmatprep.subr.bf16.mxu0 %v910_v59 }
 0x117   :  { %849 = vmatpush1.bf16.msra.mxu1 %v848_v2  ;;  %913 = vmatpush1.bf16.msra.mxu0 %v912_v3 }
 0x118   :  { %851 = vmatprep.subr.bf16.mxu1 %v850_v5  ;;  %915 = vmatprep.subr.bf16.mxu0 %v914_v6 }
 0x11b   :  { %853 = vmatpush1.bf16.msra.mxu1 %v852_v10  ;;  %917 = vmatpush1.bf16.msra.mxu0 %v916_v11 }
 0x11e   :  { %568 = vmatmul.mubr.f32.vlgmr.msra.gmra.mrb[2].mxu1 %v1381_v22  ;;  %639 = vmatmul.mubr.f32.vlgmr.msra.gmra.mrb[4].mxu0 %v1381_v22 }
 0x1b1   :  { %v427_v16 = vpop.f32.mrb[0].mxu1  ;;  %v498_v17 = vpop.f32.mrb[2].mxu0 }
 0x1b2   :  { %v428_v18 = vadd.f32 %v427_v16, %v353_v12  ;;  %v499_v22 = vadd.f32 %v498_v17, %v355_v13  ;;  %v429_v19 = vpop.f32.mrb[1].mxu1  ;;  %v500_v20 = vpop.f32.mrb[3].mxu0 }
 0x1b3   :  { %v430_v21 = vadd.f32 %v429_v19, %v354_v14  ;;  %v501_v23 = vadd.f32 %v500_v20, %v356_v15 }
 0x1b4   :  { %645 = vst [vmem:[%s1787_s4] sm:$0xff] %v428_v18  ;;  %647 = vst [vmem:[%s1787_s4 + $0x10] sm:$0xff] %v499_v22 }
 0x1b5   :  { %646 = vst [vmem:[%s1787_s4 + $0x8] sm:$0xff] %v430_v21  ;;  %648 = vst [vmem:[%s1787_s4 + $0x18] sm:$0xff] %v501_v23 }
 0x1bc   :  { %v357_v24 = vld [vmem:[%s1786_s3 + $0x20] sm:$0xff]  ;;  %v359_v25 = vld [vmem:[%s1786_s3 + $0x30] sm:$0xff]  ;;  %v358_v26 = vld [vmem:[%s1786_s3 + $0x28] sm:$0xff] }
 0x1bd   :  { %v360_v27 = vld [vmem:[%s1786_s3 + $0x38] sm:$0xff] }
 0x1f1   :  { %v569_v28 = vpop.f32.mrb[2].mxu1  ;;  %v640_v29 = vpop.f32.mrb[4].mxu0 }
 0x1f2   :  { %v570_v30 = vadd.f32 %v569_v28, %v357_v24  ;;  %v641_v31 = vadd.f32 %v640_v29, %v359_v25  ;;  %v571_v32 = vpop.f32.mrb[3].mxu1  ;;  %v642_v33 = vpop.f32.mrb[5].mxu0 }
 0x1f3   :  { %v572_v34 = vadd.f32 %v571_v32, %v358_v26  ;;  %v643_v35 = vadd.f32 %v642_v33, %v360_v27 }
 0x1f4   :  { %649 = vst [vmem:[%s1787_s4 + $0x20] sm:$0xff] %v570_v30  ;;  %651 = vst [vmem:[%s1787_s4 + $0x30] sm:$0xff] %v641_v31 }
 0x1f5   :  { %650 = vst [vmem:[%s1787_s4 + $0x28] sm:$0xff] %v572_v34  ;;  %652 = vst [vmem:[%s1787_s4 + $0x38] sm:$0xff] %v643_v35 }

</bundles_post_ra>
